<compile_context>
chip_gen: v7x
topology: tpu7x:2x2x1
jax: 0.10.0
libtpu: 0.0.40
codegen_flags: <defaults>
</compile_context>

<pallas_src>
import functools

import jax
import jax.numpy as jnp
from jax.experimental import pallas as pl
from jax.experimental.pallas import tpu as pltpu


def _round_up(v: int, m: int) -> int:
    return (v + m - 1) // m * m


def _vmem_capacity_bytes() -> int:
    try:
        info = pltpu.get_tpu_info()
        v = getattr(info, "vmem_capacity_bytes", None)
        if v:
            return int(v)
    except Exception:
        pass
    return 64 * 1024 * 1024  # conservative (v7x-sized) default


def _lora_kernel(adapter_ids_ref, x_ref, bT_ref, aT_ref, o_ref, *, scaling):
    # Shapes (leading size-1 dims squeezed by the BlockSpecs):
    #   x_ref:  (tseq, in_f)   activations tile
    #   bT_ref: (in_f, rank)   selected adapter's B, K-major (resident per batch elem)
    #   aT_ref: (rank, out_f)  selected adapter's A, K-major (resident per batch elem)
    #   o_ref:  (tseq, out_f)
    x = x_ref[...]
    bx = jnp.dot(x, bT_ref[...], preferred_element_type=jnp.float32)   # (tseq, rank)
    # Keep the MXU in a uniform low-precision input mode when feeding bf16
    # (no-op for f32); the lane-sparse (tseq, rank) intermediate stays small.
    bx = bx.astype(x.dtype)
    out = jnp.dot(bx, aT_ref[...], preferred_element_type=jnp.float32)  # (tseq, out_f)
    # TODO(synk): dropout omitted — module default p=0.0 / eval mode => identity.
    o_ref[...] = (out * scaling).astype(o_ref.dtype)


def multilora_forward(x, A, B, adapter_ids, *, alpha=1.0, rank=8,
                      compute_dtype=None, tseq=None):
    """MultiLoRALayerMaskingHomEfficient forward.

    x:           [batch, seq, in_f]
    A:           [n_adapters, out_f, rank]
    B:           [n_adapters, rank, in_f]
    adapter_ids: [batch] int
    compute_dtype: optional dtype to feed the kernel (recommended jnp.bfloat16;
                   accumulation stays f32).  None => use x.dtype.
    returns      [batch, seq, out_f]  (dtype == compute dtype)
    """
    batch, seq, in_f = x.shape
    n_adapters, out_f, r = A.shape
    assert r == rank and B.shape == (n_adapters, rank, in_f)
    assert adapter_ids.shape == (batch,)
    scaling = alpha / rank

    if compute_dtype is not None:
        x = x.astype(compute_dtype)
        A = A.astype(compute_dtype)
        B = B.astype(compute_dtype)
    dtype = x.dtype
    itemsize = jnp.dtype(dtype).itemsize

    # Match torch's negative-index semantics and guard against OOB ids
    # (index_map gathers have no runtime bounds check).
    adapter_ids = adapter_ids.astype(jnp.int32) % n_adapters

    # One-time K-major transposes: both in-kernel dots become (M,K)x(K,N).
    B_t = jnp.swapaxes(B, 1, 2)   # [n_adapters, in_f, rank]
    A_t = jnp.swapaxes(A, 1, 2)   # [n_adapters, rank, out_f]

    # Lane-dense padding of the feature dims only (no-op for real model dims,
    # which are multiples of 128).  seq is intentionally NOT padded.
    in_f_p = _round_up(in_f, 128)
    out_f_p = _round_up(out_f, 128)
    if in_f_p != in_f:
        x = jnp.pad(x, ((0, 0), (0, 0), (0, in_f_p - in_f)))
        B_t = jnp.pad(B_t, ((0, 0), (0, in_f_p - in_f), (0, 0)))
    if out_f_p != out_f:
        A_t = jnp.pad(A_t, ((0, 0), (0, 0), (0, out_f_p - out_f)))

    # ---- per-generation VMEM sizing ---------------------------------------
    phys_vmem = _vmem_capacity_bytes()
    big_vmem = phys_vmem >= 96 * 1024 * 1024      # v5e/v6e: 128 MiB; v7x: 64 MiB
    row_bytes = (in_f_p + out_f_p) * itemsize     # one seq row of x + out
    # Pallas double-buffers every BlockSpec (adapters included, even if resident).
    adapter_buf_bytes = 2 * rank * (in_f_p + out_f_p) * itemsize

    if tseq is None:
        budget = (88 if big_vmem else 40) * 1024 * 1024
        tseq_cap = 2048 if big_vmem else 512
        tseq = max(16, min(tseq_cap,
                           (budget - adapter_buf_bytes) // (2 * row_bytes)))
    tseq = min(int(tseq), seq)
    if tseq < seq:
        align = 16 if itemsize < 4 else 8   # bf16 packs 2 rows per sublane
        tseq = max(align, tseq - tseq % align)
    n_seq_tiles = pl.cdiv(seq, tseq)

    # v7x: 2 TensorCores shard the (parallel, parallel) grid — ensure >= 2 steps.
    if (not big_vmem) and batch * n_seq_tiles < 2 and seq >= 32:
        tseq = _round_up(pl.cdiv(seq, 2), 16)
        n_seq_tiles = pl.cdiv(seq, tseq)

    # Right-sized limit (double buffering already included above), with
    # headroom; cap well below physical VMEM (v7x must not request all 64 MiB).
    vmem_need = 2 * tseq * row_bytes + adapter_buf_bytes
    vmem_cap = (100 if big_vmem else 52) * 1024 * 1024
    vmem_limit = int(min(vmem_cap, max(32 * 1024 * 1024, vmem_need + vmem_need // 4)))

    cost = pl.CostEstimate(
        flops=2 * batch * seq * rank * (in_f_p + out_f_p),
        transcendentals=0,
        bytes_accessed=itemsize * (batch * seq * (in_f_p + out_f_p)
                                   + batch * rank * (in_f_p + out_f_p)),
    )

    out = pl.pallas_call(
        functools.partial(_lora_kernel, scaling=scaling),
        out_shape=jax.ShapeDtypeStruct((batch, seq, out_f_p), dtype),
        grid_spec=pltpu.PrefetchScalarGridSpec(
            num_scalar_prefetch=1,
            # seq is the INNER grid axis: A/B block indices depend only on b,
            # so the adapter tiles are not re-DMA'd across a batch element's
            # seq tiles.  The partial last seq tile is masked by Pallas.
            grid=(batch, n_seq_tiles),
            in_specs=[
                pl.BlockSpec((None, tseq, in_f_p), lambda b, s, ids: (b, s, 0)),
                # NOTE: if a profile shows exposed DMA on x (v7x), add
                # pipeline_mode=pl.Buffered(3) to this spec after re-checking VMEM.
                pl.BlockSpec((None, in_f_p, rank), lambda b, s, ids: (ids[b], 0, 0)),
                pl.BlockSpec((None, rank, out_f_p), lambda b, s, ids: (ids[b], 0, 0)),
            ],
            out_specs=pl.BlockSpec((None, tseq, out_f_p), lambda b, s, ids: (b, s, 0)),
        ),
        compiler_params=pltpu.CompilerParams(
            # No reduction axis — both grid axes are independent; "parallel"
            # lets v7x's two TensorCores shard the work.
            dimension_semantics=("parallel", "parallel"),
            vmem_limit_bytes=vmem_limit,
        ),
        cost_estimate=cost,
    )(adapter_ids, x, B_t, A_t)

    if out_f_p != out_f:
        out = out[:, :, :out_f]
    return out


def _reference(x, A, B, adapter_ids, alpha, rank):
    B_req = B[adapter_ids]
    A_req = A[adapter_ids]
    Bx = jnp.einsum("bni,bri->bnr", x, B_req)
    return jnp.einsum("bnr,bor->bno", Bx, A_req) * (alpha / rank)


if __name__ == "__main__":
    # Small shapes consistent with the module's forward.
    batch, seq, in_features, out_features = 2, 8, 32, 32
    rank, alpha, n_adapters = 8, 1.0, 3

    key = jax.random.PRNGKey(0)
    k_x, k_a, k_b, k_x2 = jax.random.split(key, 4)

    x = jax.random.normal(k_x, (batch, seq, in_features), dtype=jnp.float32)
    # Module __init__: A = randn * 0.02, B = zeros.  B is randomized (small)
    # here so the numeric cross-checks are non-trivial.
    A = 0.02 * jax.random.normal(k_a, (n_adapters, out_features, rank), dtype=jnp.float32)
    B = 0.02 * jax.random.normal(k_b, (n_adapters, rank, in_features), dtype=jnp.float32)
    adapter_ids = jnp.array([2, 0], dtype=jnp.int32)

    ref = _reference(x, A, B, adapter_ids, alpha, rank)

    # 1) f32 path (tight tolerance).
    out = jax.block_until_ready(
        multilora_forward(x, A, B, adapter_ids, alpha=alpha, rank=rank))
    assert out.shape == (batch, seq, out_features)
    assert jnp.allclose(out, ref, atol=1e-5, rtol=1e-5)

    # 2) bf16 feed path (recommended production mode — kernel is HBM-BW bound).
    out_bf16 = jax.block_until_ready(
        multilora_forward(x, A, B, adapter_ids, alpha=alpha, rank=rank,
                          compute_dtype=jnp.bfloat16))
    assert out_bf16.dtype == jnp.bfloat16
    assert jnp.allclose(out_bf16.astype(jnp.float32), ref, atol=1e-4, rtol=5e-2)

    # 3) seq not a multiple of tseq: exercises the masked partial last seq tile
    #    (no wrapper-side jnp.pad / slice on the seq axis).
    seq3 = 40
    x3 = jax.random.normal(k_x2, (batch, seq3, in_features), dtype=jnp.float32)
    ref3 = _reference(x3, A, B, adapter_ids, alpha, rank)
    out3 = jax.block_until_ready(
        multilora_forward(x3, A, B, adapter_ids, alpha=alpha, rank=rank, tseq=16))
    assert out3.shape == (batch, seq3, out_features)
    assert jnp.allclose(out3, ref3, atol=1e-5, rtol=1e-5)

    print("KERNEL_OK")
</pallas_src>

<mosaic_0001>
module attributes {stable_mosaic.version = 11 : i64} {
  func.func @_lora_kernel(%arg0: i32, %arg1: i32, %arg2: memref<2xi32, #tpu.memory_space<smem>>, %arg3: memref<1x8x128xf32, #tpu.memory_space<vmem>>, %arg4: memref<1x128x8xf32, #tpu.memory_space<vmem>>, %arg5: memref<1x8x128xf32, #tpu.memory_space<vmem>>, %arg6: memref<1x8x128xf32, #tpu.memory_space<vmem>>) attributes {dimension_semantics = [#tpu.dimension_semantics<parallel>, #tpu.dimension_semantics<parallel>], iteration_bounds = array<i64: 2, 1>, scalar_prefetch = 1 : i64, scratch_operands = 0 : i64, tpu.core_type = #tpu.core_type<tc>, window_params = [{transform_indices = @transform_0, window_bounds = array<i64: 1, 8, 128>}, {transform_indices = @transform_1, window_bounds = array<i64: 1, 128, 8>}, {transform_indices = @transform_2, window_bounds = array<i64: 1, 8, 128>}, {transform_indices = @transform_3, window_bounds = array<i64: 1, 8, 128>}]} {
    %c0 = arith.constant 0 : index
    %c0_0 = arith.constant 0 : index
    %c0_1 = arith.constant 0 : index
    %0 = vector.load %arg3[%c0, %c0_0, %c0_1] : memref<1x8x128xf32, #tpu.memory_space<vmem>>, vector<1x8x128xf32>
    %1 = vector.shape_cast %0 : vector<1x8x128xf32> to vector<8x128xf32>
    %c0_2 = arith.constant 0 : index
    %c0_3 = arith.constant 0 : index
    %c0_4 = arith.constant 0 : index
    %2 = vector.load %arg4[%c0_2, %c0_3, %c0_4] : memref<1x128x8xf32, #tpu.memory_space<vmem>>, vector<1x128x8xf32>
    %3 = vector.shape_cast %2 : vector<1x128x8xf32> to vector<128x8xf32>
    %cst = arith.constant dense<0.000000e+00> : vector<8x8xf32>
    %4 = tpu.matmul %1, %3, %cst {dimension_numbers = #tpu.dot_dimension_numbers<[1], [0], [0], [1], [0, 0, 1, 1], [], []>} : vector<8x128xf32>, vector<128x8xf32>, vector<8x8xf32> -> vector<8x8xf32>
    %c0_5 = arith.constant 0 : index
    %c0_6 = arith.constant 0 : index
    %c0_7 = arith.constant 0 : index
    %5 = vector.load %arg5[%c0_5, %c0_6, %c0_7] : memref<1x8x128xf32, #tpu.memory_space<vmem>>, vector<1x8x128xf32>
    %6 = vector.shape_cast %5 : vector<1x8x128xf32> to vector<8x128xf32>
    %cst_8 = arith.constant dense<0.000000e+00> : vector<8x128xf32>
    %7 = tpu.matmul %4, %6, %cst_8 {dimension_numbers = #tpu.dot_dimension_numbers<[1], [0], [0], [1], [0, 0, 1, 1], [], []>} : vector<8x8xf32>, vector<8x128xf32>, vector<8x128xf32> -> vector<8x128xf32>
    %cst_9 = arith.constant 1.250000e-01 : f32
    %8 = vector.broadcast %cst_9 : f32 to vector<8x128xf32>
    %9 = arith.mulf %7, %8 : vector<8x128xf32>
    %c0_10 = arith.constant 0 : index
    %c0_11 = arith.constant 0 : index
    %c0_12 = arith.constant 0 : index
    %10 = vector.load %arg6[%c0_10, %c0_11, %c0_12] : memref<1x8x128xf32, #tpu.memory_space<vmem>>, vector<1x8x128xf32>
    %11 = vector.shape_cast %10 : vector<1x8x128xf32> to vector<8x128xf32>
    %12 = vector.shape_cast %9 : vector<8x128xf32> to vector<1x8x128xf32>
    tpu.vector_store %arg6[%c0_10, %c0_11, %c0_12], %12 {strides = array<i32>} : memref<1x8x128xf32, #tpu.memory_space<vmem>>, vector<1x8x128xf32>,
    return
  }
  func.func @transform_0(%arg0: i32, %arg1: i32, %arg2: memref<2xi32, #tpu.memory_space<smem>>) -> (i32, i32, i32) {
    %c0_i32 = arith.constant 0 : i32
    %c0_i32_0 = arith.constant 0 : i32
    return %arg0, %arg1, %c0_i32 : i32, i32, i32
  }
  func.func @transform_1(%arg0: i32, %arg1: i32, %arg2: memref<2xi32, #tpu.memory_space<smem>>) -> (i32, i32, i32) {
    %0 = arith.index_cast %arg0 : i32 to index
    %1 = memref.load %arg2[%0] : memref<2xi32, #tpu.memory_space<smem>>
    %c0_i32 = arith.constant 0 : i32
    %c0_i32_0 = arith.constant 0 : i32
    %c0_i32_1 = arith.constant 0 : i32
    return %1, %c0_i32, %c0_i32_0 : i32, i32, i32
  }
  func.func @transform_2(%arg0: i32, %arg1: i32, %arg2: memref<2xi32, #tpu.memory_space<smem>>) -> (i32, i32, i32) {
    %0 = arith.index_cast %arg0 : i32 to index
    %1 = memref.load %arg2[%0] : memref<2xi32, #tpu.memory_space<smem>>
    %c0_i32 = arith.constant 0 : i32
    %c0_i32_0 = arith.constant 0 : i32
    %c0_i32_1 = arith.constant 0 : i32
    return %1, %c0_i32, %c0_i32_0 : i32, i32, i32
  }
  func.func @transform_3(%arg0: i32, %arg1: i32, %arg2: memref<2xi32, #tpu.memory_space<smem>>) -> (i32, i32, i32) {
    %c0_i32 = arith.constant 0 : i32
    %c0_i32_0 = arith.constant 0 : i32
    return %arg0, %arg1, %c0_i32 : i32, i32, i32
  }
}

</mosaic_0001>

<bundles_post_ra>
// kernel: tpu_custom_call.1
= control target key start
LH: loop header
LB: loop body
LE: loop exit
PB: predicated region body
PF: predicated region fallthrough
CT: control target
= control target key end

     0   :  { %s946_s0 = inlined_call_operand.vmem [shape: s32[2], index: 0, kind: input, shape index: {}]   ;;  %s947_s1 = inlined_call_operand.vmem [shape: f32[2,8,128], index: 1, kind: input, shape index: {}]   ;;  %s948_s2 = inlined_call_operand.vmem [shape: f32[3,128,8], index: 2, kind: input, shape index: {}]   ;;  %s949_s3 = inlined_call_operand.vmem [shape: f32[3,8,128], index: 3, kind: input, shape index: {}]   ;;  %s950_s4 = inlined_call_operand.hbm [shape: f32[2,8,128], index: 4, kind: output, shape index: {}]  }
   0x1   :  { %s9_s17 = sshll.u32 %s946_s0, 4  ;;  %s10_s17 = int_to_ptr.vmem [resolvable:$true] %s9_s17 }
   0x2   :  { %s681_s18 = scalar_lea.vmem %s10_s17, 16  ;;  %p686_p1 = scmp.lt.s32.totalorder %s10_s17, %s10_s17 }
   0x3   :  { %p682_p0 = scmp.ne.s32.totalorder %s10_s17, %s681_s18  ;;  %p687_p2 = scmp.lt.s32.totalorder %s681_s18, %s681_s18 }
   0x5   :  { %p688_p3 = por %p687_p2, %p686_p1 }
   0x7   :  { %p689_p4 = pnand %p688_p3, %p682_p0 }
   0x9   :  { %692 = shalt.err (!%p689_p4)  }
   0xa   :  { %s775_s19 = smov [#allocation3]  }
   0xb   :  { %12 = dma.vmem_to_smem %s10_s17, 16, %s775_s19, [#allocation2] }
   0xc   :  { %745 = dma.done.wait [#allocation2], 16 }
   0xd   :  { %746 = vsyncadd [#allocation2], 4294967280 }
   0xe   :  { %14 = sfence }
   0xf   :  { %15 = vsyncpa [#allocation5], 0 }
  0x10   :  { %17 = vsyncpa [#allocation5 + $0x1], 0  ;;  %s808_s20 = smov 0   ;;  %s810_s21 = smov 0  }
  0x11   :  { %s812_s0 = smov 0   ;;  %s814_s22 = smov 0  }
  0x12   :  { %s816_s23 = smov 0   ;;  %s818_s24 = smov 0  }
  0x13 LB: > { %s523_s25 = sadd.s32 4294967295, %s773_s24   ;;  %s524_s26 = sadd.s32 4294967294, %s773_s24   ;;  %s773_s24 = sphi %s818_s24, %s23_s24   ;;  %s769_s23 = sphi %s816_s23, %s957_s23   ;;  %s765_s22 = sphi %s814_s22, %s956_s22   ;;  %s761_s0 = sphi %s812_s0, %s955_s0   ;;  %s757_s21 = sphi %s810_s21, %s954_s21   ;;  %s753_s20 = sphi %s808_s20, %s953_s20  }
  0x14   : > { %s35_s27 = sadd.s32 1, %s769_s23  ;;  %s128_s28 = sadd.s32 1, %s761_s0 }
  0x15   : > { %p37_p5 = scmp.ge.s32.totalorder %s35_s27, 2  ;;  %p138_p6 = scmp.ne.s32.totalorder %s761_s0, %s757_s21 }
  0x16   : > { %p139_p7 = scmp.eq.s32.totalorder %s523_s25, 1  ;;  %p144_p8 = scmp.ne.s32.totalorder %s757_s21, %s753_s20 }
  0x17   : > { %s959_s27 = smov (%p37_p5, %s35_s27), 0  ;;  %p145_p10 = scmp.eq.s32.totalorder %s524_s26, 1 }
  0x18   : > { %p848_p9 = por %p139_p7, %p138_p6  ;;  %s123_s30 = ssub.s32 %s769_s23, %s959_s27 }
  0x19   : > { %p527_p11 = scmp.ge.s32.totalorder %s773_s24, 1  ;;  %p126_p12 = scmp.eq.s32.totalorder %s123_s30, 0 }
  0x1a   : > { %p855_p13 = por %p145_p10, %p144_p8  ;;  %p192_p0 = scmp.lt.s32.totalorder %s773_s24, 3 }
  0x1b   : > { %s861_s6 = scalar_select %p126_p12, %s761_s0, %s128_s28  }
  0x1c   : > { %p193_p1 = pnand %p527_p11, %p192_p0 }
  0x1d   : > { %s236_s7 = sld [smem:[#allocation3 + %s765_s22]] (!%p193_p1)  ;;  %v776_v0 = vmov (!%p193_p1), 0.0|0.0   ;;  %vm777_vm0 = vmmov (!%p193_p1), 0   ;;  %v778_v1 = vmov (!%p193_p1), 0.0   ;;  %p229_p3 = scmp.lt.s32.totalorder (!%p193_p1), %s765_s22, 1  ;;  %vm337_vm1 = vcmask (!%p193_p1), 64512  }
  0x1e   : > { %196 = sbr.rel (%p193_p1) target bundleno = 514 (0x202), region = 32  ;;  %598 = vmatprep.subr.bf16.mxu0 (!%p193_p1), %v776_v0  ;;  %590 = vmatprep.mubr.msk.f32.mxu0 (!%p193_p1), %vm777_vm0, %v778_v1  ;;  %s243_s17 = sld [smem:[#allocation3 + %s765_s22]] (!%p193_p1) }
  0x1f   : > { %593 = vmatprep.subr.mxu1 (!%p193_p1), %v778_v1  ;;  %595 = vmatprep.mubr.msk.f32.mxu1 (!%p193_p1), %vm777_vm0, %v778_v1  ;;  %s226_s28 = sand.u32 (!%p193_p1), 1, %s757_s21  }
  0x20   : > { %s528_s30 = sshll.u32 (!%p193_p1), %s226_s28, 3 }
  0x23   : > { %p237_p2 = scmp.lt.s32.totalorder (!%p193_p1), %s236_s7, 2 }
  0x24   : > { %p244_p4 = scmp.lt.s32.totalorder (!%p193_p1), %s243_s17, 2 }
  0x25   : > { %s961_s7 = smov (!%p237_p2, %s236_s7), 2 }
  0x26   : > { %s538_s8 = sshll.u32 %s961_s7, 7  ;;  %s963_s17 = smov (!%p244_p4, %s243_s17), 2 }
  0x27   : > { %s867_s11 = scalar_lea.vmem %s948_s2, %s538_s8  ;;  %s532_s18 = sshll.u32 %s963_s17, 3 }
  0x28   : > { %v250_v2 = vld [vmem:[%s867_s11] sm:$0xff]  ;;  %v251_v3 = vld [vmem:[%s867_s11 + $0x8] sm:$0xff]  ;;  %v252_v4 = vld [vmem:[%s867_s11 + $0x10] sm:$0xff]  ;;  %s230_s12 = scalar_select %p229_p3, %s765_s22, 1 }
  0x29   : > { %v599_v5 = vpack.c.bf16 %v251_v3, %v250_v2  ;;  %v253_v6 = vld [vmem:[%s867_s11 + $0x18] sm:$0xff]  ;;  %v254_v8 = vld [vmem:[%s867_s11 + $0x20] sm:$0xff]  ;;  %v255_v9 = vld [vmem:[%s867_s11 + $0x28] sm:$0xff]  ;;  %s247_s26 = scalar_lea.vmem %s949_s3, %s532_s18  ;;  %s535_s7 = sshll.u32 %s765_s22, 7 }
  0x2a   : > { %v602_v7 = vpack.c.bf16 %v253_v6, %v252_v4  ;;  %v605_v10 = vpack.c.bf16 %v255_v9, %v254_v8  ;;  %v256_v11 = vld [vmem:[%s867_s11 + $0x30] sm:$0xff]  ;;  %v257_v12 = vld [vmem:[%s867_s11 + $0x38] sm:$0xff]  ;;  %v258_v14 = vld [vmem:[%s867_s11 + $0x40] sm:$0xff]  ;;  %s529_s13 = sshll.u32 %s230_s12, 3  ;;  %s228_s8 = scalar_lea.vmem [#allocation4], %s528_s30 }
  0x2b   : > { %600 = vmatpush3.bf16.msra.mxu0 %v599_v5  ;;  %v608_v13 = vpack.c.bf16 %v257_v12, %v256_v11  ;;  %v259_v15 = vld [vmem:[%s867_s11 + $0x48] sm:$0xff]  ;;  %v260_v17 = vld [vmem:[%s867_s11 + $0x50] sm:$0xff]  ;;  %v261_v18 = vld [vmem:[%s867_s11 + $0x58] sm:$0xff]  ;;  %s235_s16 = scalar_lea.vmem %s947_s1, %s529_s13  ;;  %s428_s9 = sshll.u32 %s228_s8, 4  ;;  %s901_s9 = int_to_ptr.vmem [resolvable:$true] %s428_s9 }
  0x2c   : > { %601 = vmatprep.subr.bf16.mxu0 %v776_v0  ;;  %v611_v16 = vpack.c.bf16 %v259_v15, %v258_v14  ;;  %v614_v19 = vpack.c.bf16 %v261_v18, %v260_v17  ;;  %v262_v20 = vld [vmem:[%s867_s11 + $0x60] sm:$0xff]  ;;  %v263_v21 = vld [vmem:[%s867_s11 + $0x68] sm:$0xff]  ;;  %v264_v23 = vld [vmem:[%s867_s11 + $0x70] sm:$0xff]  ;;  %s899_s12 = scalar_lea.hbm %s950_s4, %s535_s7  ;;  %s414_s13 = scalar_lea.sflag [#allocation5], %s226_s28 }
  0x2d   : > { %v617_v22 = vpack.c.bf16 %v263_v21, %v262_v20  ;;  %v265_v24 = vld [vmem:[%s867_s11 + $0x78] sm:$0xff]  ;;  %v249_v26 = vld [vmem:[%s235_s16] sm:$0xff]  ;;  %s693_s14 = scalar_lea.vmem %s901_s9, 128  ;;  %s779_s22 = smov [#allocation4]  }
  0x2e   : > { %v620_v25 = vpack.c.bf16 %v265_v24, %v264_v23  ;;  %v336_v27 = vld [vmem:[%s247_s26] sm:$0xff]  ;;  %p694_p5 = scmp.ne.s32.totalorder %s901_s9, %s693_s14  ;;  %s697_s15 = sshll.u32 %s779_s22, 4  ;;  %s698_s15 = int_to_ptr.vmem [resolvable:$false] %s697_s15 }
  0x2f   : > { %603 = vmatpush3.bf16.msra.mxu0 %v602_v7  ;;  %594 = vmatpush3.msra.mxu1 %v336_v27  ;;  %s699_s16 = scalar_lea.vmem %s698_s15, 256  ;;  %p700_p8 = scmp.lt.s32.totalorder %s901_s9, %s698_s15 }
  0x30   : > { %604 = vmatprep.subr.bf16.mxu0 %v776_v0  ;;  %p695_p6 = pnand %p694_p5, %p848_p9  ;;  %p701_p10 = scmp.lt.s32.totalorder %s699_s16, %s693_s14 }
  0x32   : > { %p696_p7 = pneg %p695_p6  ;;  %p702_p11 = por %p701_p10, %p700_p8 }
  0x33   : > { %606 = vmatpush3.bf16.msra.mxu0 %v605_v10 }
  0x34   : > { %607 = vmatprep.subr.bf16.mxu0 %v776_v0  ;;  %p703_p12 = pnand %p702_p11, %p696_p7 }
  0x37   : > { %609 = vmatpush3.bf16.msra.mxu0 %v608_v13 }
  0x38   : > { %610 = vmatprep.subr.bf16.mxu0 %v776_v0 }
  0x3b   : > { %612 = vmatpush3.bf16.msra.mxu0 %v611_v16 }
  0x3c   : > { %613 = vmatprep.subr.bf16.mxu0 %v776_v0 }
  0x3f   : > { %615 = vmatpush3.bf16.msra.mxu0 %v614_v19 }
  0x40   : > { %616 = vmatprep.subr.bf16.mxu0 %v776_v0 }
  0x43   : > { %618 = vmatpush3.bf16.msra.mxu0 %v617_v22 }
  0x44   : > { %619 = vmatprep.subr.bf16.mxu0 %v776_v0 }
  0x47   : > { %621 = vmatpush3.bf16.msra.mxu0 %v620_v25 }
  0x4a   : > { %591 = vmatmul.mubr.f32.vlgmr.msra.gmra.mrb[0].mxu0 %v249_v26 }
 0x11d   : > { %v332_v28 = vpop.f32.mrb[0].mxu0 }
 0x11e   : > { %v592_v29 = vpop.f32.mrb[1].mxu0  ;;  %596 = vmatmul.mubr.msk.f32.vlgmr.msra.gmra.mrb[0].mxu1 %vm337_vm1, %v332_v28 }
 0x1f1   : > { %v407_v30 = vpop.f32.mrb[0].mxu1 }
 0x1f2   : > { %v411_v31 = vmul.f32 0.125, %v407_v30  ;;  %v597_v32 = vpop.f32.mrb[1].mxu1 }
 0x1f4   : > { %412 = vst [vmem:[%s228_s8] sm:$0xff] %v411_v31 }
 0x1f5   : > { %706 = shalt.err (!%p703_p12)
}
 0x1f6   : > { %s707_s17 = scalar_lea.hbm %s899_s12, 128  ;;  %s711_s25 = scalar_lea.hbm %s950_s4, 256 }
 0x1f7   : > { %p708_p0 = scmp.ne.s32.totalorder %s899_s12, %s707_s17  ;;  %p712_p3 = scmp.lt.u32.totalorder %s899_s12, %s950_s4 }
 0x1f8   : > { %p713_p4 = scmp.lt.u32.totalorder %s711_s25, %s707_s17  ;;  %p715_p6 = scmp.lt.u32.totalorder %s707_s17, %s899_s12 }
 0x1f9   : > { %p709_p1 = pnand %p708_p0, %p848_p9 }
 0x1fa   : > { %p714_p5 = por %p713_p4, %p712_p3 }
 0x1fb   : > { %p710_p2 = pneg %p709_p1 }
 0x1fc   : > { %p716_p7 = por %p715_p6, %p714_p5 }
 0x1fe   : > { %p717_p8 = pnand %p716_p7, %p710_p2 }
 0x200   : > { %720 = shalt.err (!%p717_p8)
}
 0x201   : > { %622 = dma.vmem_to_hbm [thread:$0]  (%p848_p9), %s901_s9, 128, %s899_s12, %s414_s13  }
 0x202 PF: > { %p628_p10 = scmp.ge.s32.totalorder %s773_s24, 2  ;;  %s440_s30 = sand.u32 1, %s753_s20  }
 0x203   : > { %s441_s7 = scalar_lea.sflag [#allocation5], %s440_s30 }
 0x204   : > { %p625_p11 = pnand %p628_p10, %p855_p13 }
 0x206   : > { %748 = dma.done.wait (!%p625_p11), %s441_s7, 128  }
 0x207   : > { %750 = vsyncadd (!%p625_p11), %s441_s7, 4294967168  ;;  %s23_s24 = sadd.s32 1, %s773_s24   ;;  %s953_s20 = smov %s757_s21 }
 0x208   : > { %p20_p12 = scmp.ge.s32.totalorder %s23_s24, 4   ;;  %s954_s21 = smov %s761_s0 }
 0x209   : > { %s955_s0 = smov %s861_s6  ;;  %s956_s22 = smov %s769_s23 }
 0x20a   : > { %s957_s23 = smov %s959_s27  ;;  %22 = sbr.rel (!%p20_p12) target bundleno = 19 (0x13), region = 73 }
 0x211   :  { %446 = vsyncpa [#allocation5], 1 }
 0x212   :  { %448 = vsyncpa [#allocation5 + $0x1], 1 }

</bundles_post_ra>
